<compile_context>
chip_gen: v7x
topology: tpu7x:2x2x1
jax: 0.10.0
libtpu: 0.0.40
codegen_flags: <defaults>
</compile_context>

<pallas_src>
import jax
import jax.numpy as jnp
from jax import lax
from jax.experimental import pallas as pl
from jax.experimental.pallas import tpu as pltpu


def _matmul_precision(dtype):
    # f32 operands: request exact f32 MXU passes so results match an f32
    # reference everywhere (and interpret mode does not downcast to bf16).
    return lax.Precision.HIGHEST if dtype == jnp.float32 else None


# ----------------------------------------------------------------------------
# Kernels
# ----------------------------------------------------------------------------
def _fused_kernel(x_ref, wqt_ref, bq_ref, wkt_ref, bk_ref, probs_ref):
    """Whole-sequence path (several batch elements per grid step).

    x_ref:            (bb*S, D)  rows of `bb` batch elements (flattened in wrapper)
    wqt_ref/wkt_ref:  (D, D)     pre-transposed weights (x @ Wt == nn.Linear)
    bq_ref/bk_ref:    (1, D)     float32 biases
    probs_ref:        (bb, S, S)
    """
    bb, s, _ = probs_ref.shape
    prec = _matmul_precision(x_ref.dtype)

    # Projections for all bb batch elements at once (MXU, f32 accumulation).
    q = (jnp.dot(x_ref[...], wqt_ref[...], precision=prec,
                 preferred_element_type=jnp.float32) + bq_ref[...]).astype(x_ref.dtype)
    k = (jnp.dot(x_ref[...], wkt_ref[...], precision=prec,
                 preferred_element_type=jnp.float32) + bk_ref[...]).astype(x_ref.dtype)

    for bi in range(bb):                      # bb is a small static Python int
        qb = q[bi * s:(bi + 1) * s]           # (S, D) sublane-aligned static slice
        kb = k[bi * s:(bi + 1) * s]
        # scores = Q @ K^T without materializing a transpose.
        scores = lax.dot_general(qb, kb, (((1,), (1,)), ((), ())),
                                 precision=prec,
                                 preferred_element_type=jnp.float32)      # (S, S)
        m = jnp.max(scores, axis=-1, keepdims=True)
        e = jnp.exp(scores - m)
        # Exact reciprocal of the (S, 1) denominator: rows sum to 1 to f32 accuracy.
        inv = 1.0 / jnp.sum(e, axis=-1, keepdims=True)
        probs_ref[bi] = (e * inv).astype(probs_ref.dtype)


def _qtiled_kernel(x_ref, wqt_ref, bq_ref, wkt_ref, bk_ref, probs_ref, k_ref):
    """Query-tiled path for long sequences.

    x_ref:     (1, S, D)  full sequence for this batch element (resident across qi)
    k_ref:     (S, D)     VMEM scratch holding K for this batch element
    probs_ref: (1, TQ, S)
    """
    tq = probs_ref.shape[1]
    qi = pl.program_id(1)
    prec = _matmul_precision(x_ref.dtype)

    # Project K exactly once per batch element (qi is the innermost, "arbitrary"
    # grid axis, so qi == 0 runs first for every batch element).
    @pl.when(qi == 0)
    def _():
        kf = jnp.dot(x_ref[0], wkt_ref[...], precision=prec,
                     preferred_element_type=jnp.float32) + bk_ref[...]
        k_ref[...] = kf.astype(k_ref.dtype)

    start = pl.multiple_of(qi * tq, tq)
    xq = x_ref[0, pl.ds(start, tq), :]                                   # (TQ, D)
    q = (jnp.dot(xq, wqt_ref[...], precision=prec,
                 preferred_element_type=jnp.float32) + bq_ref[...]).astype(x_ref.dtype)

    scores = lax.dot_general(q, k_ref[...], (((1,), (1,)), ((), ())),
                             precision=prec,
                             preferred_element_type=jnp.float32)         # (TQ, S)
    m = jnp.max(scores, axis=-1, keepdims=True)
    e = jnp.exp(scores - m)
    inv = 1.0 / jnp.sum(e, axis=-1, keepdims=True)
    probs_ref[0] = (e * inv).astype(probs_ref.dtype)


# ----------------------------------------------------------------------------
# Wrapper
# ----------------------------------------------------------------------------
def self_attention(x, wq, bq, wk, bk, *, tq=256, mxu_dtype=None, probs_dtype=None,
                   vmem_limit_bytes=40 * 1024 * 1024):
    """softmax((x @ Wq^T + bq) @ (x @ Wk^T + bk)^T, axis=-1) -> (B, S, S).

    x: (B, S, D); wq/wk: (D, D) in PyTorch nn.Linear (out, in) layout; bq/bk: (D,).
    mxu_dtype:   operand dtype for the matmuls (accumulation is always f32).
                 Pass jnp.bfloat16 for f32 inputs for ~3-4x MXU throughput.
    probs_dtype: output dtype (default x.dtype); bf16 halves HBM writeback.
    vmem_limit_bytes: scoped VMEM limit. 40 MiB default is safe on v7x (64 MiB
                 physical per TC); raise to ~96 MiB on v5e/v6e (128 MiB).
    """
    B, S, D = x.shape
    out_dtype = jnp.dtype(probs_dtype) if probs_dtype is not None else jnp.dtype(x.dtype)
    mxu_dtype = jnp.dtype(mxu_dtype) if mxu_dtype is not None else jnp.dtype(x.dtype)

    # Trace-time (free) prep: pre-transpose weights and cast operands once, so
    # the kernel never transposes through the XLU and x DMA shrinks for bf16.
    wqt = wq.T.astype(mxu_dtype)
    wkt = wk.T.astype(mxu_dtype)
    bq2 = bq.reshape(1, D).astype(jnp.float32)
    bk2 = bk.reshape(1, D).astype(jnp.float32)
    xc = x.astype(mxu_dtype)

    isz = mxu_dtype.itemsize
    osz = jnp.dtype(out_dtype).itemsize
    budget = (vmem_limit_bytes * 3) // 5           # headroom for Mosaic internals
    weight_bytes = 2 * (2 * D * D * isz + 2 * D * 4)

    long_seq = (S > tq) and (S % tq == 0)

    if not long_seq:
        # ------------- fused whole-sequence path (small / ragged S) -------------
        # TODO(synk): ragged long sequences (S > tq, S % tq != 0) fall back here;
        # pad S (and mask the padded keys) for a production kernel so the
        # (bb, S, S) block stays bounded on v7x's 64 MiB VMEM.
        # TODO(synk): for S % 128 != 0 the (..., S) output stores are masked
        # (vst.msk); pad the probs lane dim to 128 in the wrapper if store-bound.
        x_flat = xc.reshape(B * S, D)
        sub = 8 if isz >= 4 else (16 if isz == 2 else 32)   # sublane packing

        def step_bytes(cand):
            rows = cand * S
            return (2 * rows * D * isz                 # x block, double-buffered
                    + 2 * cand * S * S * osz           # probs block, double-buffered
                    + rows * D * (8 + 2 * isz)         # q/k f32 temporaries + casts
                    + 3 * S * S * 4                    # scores / exp / probs (f32)
                    + weight_bytes)

        bb, fallback = None, None
        for cand in range(B, 0, -1):                   # largest legal block that fits
            if B % cand:
                continue
            if not (cand == B or (cand * S) % sub == 0):
                continue
            if fallback is None or cand < fallback:
                fallback = cand
            if bb is None and step_bytes(cand) <= budget:
                bb = cand
        if bb is None:
            bb = fallback if fallback is not None else 1

        return pl.pallas_call(
            _fused_kernel,
            out_shape=jax.ShapeDtypeStruct((B, S, S), out_dtype),
            grid_spec=pltpu.PrefetchScalarGridSpec(
                num_scalar_prefetch=0,
                grid=(B // bb,),
                in_specs=[
                    pl.BlockSpec((bb * S, D), lambda b: (b, 0)),   # x rows
                    pl.BlockSpec((D, D), lambda b: (0, 0)),        # Wq^T
                    pl.BlockSpec((1, D), lambda b: (0, 0)),        # bq
                    pl.BlockSpec((D, D), lambda b: (0, 0)),        # Wk^T
                    pl.BlockSpec((1, D), lambda b: (0, 0)),        # bk
                ],
                out_specs=pl.BlockSpec((bb, S, S), lambda b: (b, 0, 0)),
            ),
            compiler_params=pltpu.CompilerParams(
                dimension_semantics=("parallel",),
                vmem_limit_bytes=vmem_limit_bytes,
            ),
        )(x_flat, wqt, bq2, wkt, bk2)

    # ---------------- query-tiled path (long sequences) ----------------
    def qtile_bytes(t):
        return (2 * S * D * isz                # x block (resident, double-buffered)
                + S * D * isz                  # K scratch
                + 2 * t * S * osz              # probs block, double-buffered
                + 3 * t * S * 4                # scores / exp / probs f32 temporaries
                + t * D * (4 + isz)            # q tile
                + weight_bytes)

    while tq > 128 and S % (tq // 2) == 0 and qtile_bytes(tq) > budget:
        tq //= 2

    return pl.pallas_call(
        _qtiled_kernel,
        out_shape=jax.ShapeDtypeStruct((B, S, S), out_dtype),
        grid_spec=pltpu.PrefetchScalarGridSpec(
            num_scalar_prefetch=0,
            grid=(B, S // tq),
            in_specs=[
                pl.BlockSpec((1, S, D), lambda b, qi: (b, 0, 0)),  # full seq (Q slice + K)
                pl.BlockSpec((D, D), lambda b, qi: (0, 0)),        # Wq^T
                pl.BlockSpec((1, D), lambda b, qi: (0, 0)),        # bq
                pl.BlockSpec((D, D), lambda b, qi: (0, 0)),        # Wk^T
                pl.BlockSpec((1, D), lambda b, qi: (0, 0)),        # bk
            ],
            out_specs=pl.BlockSpec((1, tq, S), lambda b, qi: (b, qi, 0)),
            scratch_shapes=[pltpu.VMEM((S, D), mxu_dtype)],        # K, reused over qi
        ),
        compiler_params=pltpu.CompilerParams(
            # Batch stays "parallel" (megacore / v7x 2-TC sharding); qi must be
            # "arbitrary" because the K scratch carries state across qi steps.
            dimension_semantics=("parallel", "arbitrary"),
            vmem_limit_bytes=vmem_limit_bytes,
        ),
    )(xc, wqt, bq2, wkt, bk2)


# ----------------------------------------------------------------------------
# Pure-JAX references
# ----------------------------------------------------------------------------
def _reference(x, wq, bq, wk, bk):
    hp = lax.Precision.HIGHEST
    q = jnp.einsum("bsd,od->bso", x, wq, precision=hp) + bq
    k = jnp.einsum("bsd,od->bso", x, wk, precision=hp) + bk
    scores = jnp.einsum("bqd,bkd->bqk", q, k, precision=hp)
    return jax.nn.softmax(scores, axis=-1)


def _reference_mxu(x, wq, bq, wk, bk, mxu_dtype):
    """Reference mirroring the kernel's operand rounding (for bf16-MXU checks)."""
    xd = x.astype(mxu_dtype)
    q = (jnp.einsum("bsd,od->bso", xd, wq.astype(mxu_dtype),
                    preferred_element_type=jnp.float32) + bq).astype(mxu_dtype)
    k = (jnp.einsum("bsd,od->bso", xd, wk.astype(mxu_dtype),
                    preferred_element_type=jnp.float32) + bk).astype(mxu_dtype)
    scores = jnp.einsum("bqd,bkd->bqk", q, k, preferred_element_type=jnp.float32)
    return jax.nn.softmax(scores, axis=-1)


if __name__ == "__main__":
    key = jax.random.PRNGKey(0)

    def make_inputs(k, B, S, D, dtype=jnp.float32):
        kx, kwq, kbq, kwk, kbk = jax.random.split(k, 5)
        x = jax.random.normal(kx, (B, S, D), dtype=dtype)
        bound = 1.0 / (D ** 0.5)            # nn.Linear default init, weight (out, in)
        wq = jax.random.uniform(kwq, (D, D), jnp.float32, -bound, bound)
        bq = jax.random.uniform(kbq, (D,), jnp.float32, -bound, bound)
        wk = jax.random.uniform(kwk, (D, D), jnp.float32, -bound, bound)
        bk = jax.random.uniform(kbk, (D,), jnp.float32, -bound, bound)
        return x, wq, bq, wk, bk

    # 1) Small shape -> fused whole-sequence path (exact f32 MXU operands).
    # 2) Long sequence -> query-tiled path with the resident K scratch.
    for (B, S, D) in [(2, 8, 32), (2, 512, 128)]:
        x, wq, bq, wk, bk = make_inputs(jax.random.fold_in(key, S), B, S, D)
        probs = jax.block_until_ready(self_attention(x, wq, bq, wk, bk))
        ref = _reference(x, wq, bq, wk, bk)
        assert probs.shape == (B, S, S)
        assert jnp.allclose(probs, ref, atol=2e-3, rtol=2e-3), f"mismatch at {(B, S, D)}"
        assert jnp.allclose(jnp.sum(probs, axis=-1), 1.0, atol=2e-3), f"row sums at {(B, S, D)}"

    # 3) bf16 MXU operands (the recommended fast path for f32 inputs): compare
    #    against a reference that applies the same operand rounding.
    B, S, D = 2, 512, 128
    x, wq, bq, wk, bk = make_inputs(jax.random.fold_in(key, 9999), B, S, D)
    probs_bf = jax.block_until_ready(
        self_attention(x, wq, bq, wk, bk, mxu_dtype=jnp.bfloat16))
    ref_bf = _reference_mxu(x, wq, bq, wk, bk, jnp.bfloat16)
    assert probs_bf.shape == (B, S, S)
    assert jnp.allclose(probs_bf, ref_bf, atol=2e-3, rtol=2e-3), "bf16 MXU path mismatch"
    assert jnp.allclose(jnp.sum(probs_bf, axis=-1), 1.0, atol=2e-3), "bf16 row sums"

    print("KERNEL_OK")
</pallas_src>

<mosaic_0001>
module attributes {stable_mosaic.version = 11 : i64} {
  func.func @_fused_kernel(%arg0: i32, %arg1: memref<16x32xf32, #tpu.memory_space<vmem>>, %arg2: memref<32x32xf32, #tpu.memory_space<vmem>>, %arg3: memref<1x32xf32, #tpu.memory_space<vmem>>, %arg4: memref<32x32xf32, #tpu.memory_space<vmem>>, %arg5: memref<1x32xf32, #tpu.memory_space<vmem>>, %arg6: memref<2x8x8xf32, #tpu.memory_space<vmem>>) attributes {dimension_semantics = [#tpu.dimension_semantics<parallel>], iteration_bounds = array<i64: 1>, scalar_prefetch = 0 : i64, scratch_operands = 0 : i64, tpu.core_type = #tpu.core_type<tc>, window_params = [{transform_indices = @transform_0, window_bounds = array<i64: 16, 32>}, {pipeline_mode = #tpu.pipeline_mode<synchronous>, transform_indices = @transform_1, window_bounds = array<i64: 32, 32>}, {pipeline_mode = #tpu.pipeline_mode<synchronous>, transform_indices = @transform_2, window_bounds = array<i64: 1, 32>}, {pipeline_mode = #tpu.pipeline_mode<synchronous>, transform_indices = @transform_3, window_bounds = array<i64: 32, 32>}, {pipeline_mode = #tpu.pipeline_mode<synchronous>, transform_indices = @transform_4, window_bounds = array<i64: 1, 32>}, {transform_indices = @transform_5, window_bounds = array<i64: 2, 8, 8>}]} {
    %c0 = arith.constant 0 : index
    %c0_0 = arith.constant 0 : index
    %0 = vector.load %arg1[%c0, %c0_0] : memref<16x32xf32, #tpu.memory_space<vmem>>, vector<16x32xf32>
    %c0_1 = arith.constant 0 : index
    %c0_2 = arith.constant 0 : index
    %1 = vector.load %arg2[%c0_1, %c0_2] : memref<32x32xf32, #tpu.memory_space<vmem>>, vector<32x32xf32>
    %cst = arith.constant dense<0.000000e+00> : vector<16x32xf32>
    %2 = tpu.matmul %0, %1, %cst {dimension_numbers = #tpu.dot_dimension_numbers<[1], [0], [0], [1], [0, 0, 1, 1], [], []>, precision = #tpu.contract_precision<fp32>} : vector<16x32xf32>, vector<32x32xf32>, vector<16x32xf32> -> vector<16x32xf32>
    %c0_3 = arith.constant 0 : index
    %c0_4 = arith.constant 0 : index
    %3 = vector.load %arg3[%c0_3, %c0_4] : memref<1x32xf32, #tpu.memory_space<vmem>>, vector<1x32xf32>
    %4 = vector.broadcast %3 : vector<1x32xf32> to vector<16x32xf32>
    %5 = arith.addf %2, %4 : vector<16x32xf32>
    %c0_5 = arith.constant 0 : index
    %c0_6 = arith.constant 0 : index
    %6 = vector.load %arg1[%c0_5, %c0_6] : memref<16x32xf32, #tpu.memory_space<vmem>>, vector<16x32xf32>
    %c0_7 = arith.constant 0 : index
    %c0_8 = arith.constant 0 : index
    %7 = vector.load %arg4[%c0_7, %c0_8] : memref<32x32xf32, #tpu.memory_space<vmem>>, vector<32x32xf32>
    %cst_9 = arith.constant dense<0.000000e+00> : vector<16x32xf32>
    %8 = tpu.matmul %6, %7, %cst_9 {dimension_numbers = #tpu.dot_dimension_numbers<[1], [0], [0], [1], [0, 0, 1, 1], [], []>, precision = #tpu.contract_precision<fp32>} : vector<16x32xf32>, vector<32x32xf32>, vector<16x32xf32> -> vector<16x32xf32>
    %c0_10 = arith.constant 0 : index
    %c0_11 = arith.constant 0 : index
    %9 = vector.load %arg5[%c0_10, %c0_11] : memref<1x32xf32, #tpu.memory_space<vmem>>, vector<1x32xf32>
    %10 = vector.broadcast %9 : vector<1x32xf32> to vector<16x32xf32>
    %11 = arith.addf %8, %10 : vector<16x32xf32>
    %12 = vector.extract_strided_slice %5 {offsets = [0, 0], sizes = [8, 32], strides = [1, 1]} : vector<16x32xf32> to vector<8x32xf32>
    %13 = vector.extract_strided_slice %11 {offsets = [0, 0], sizes = [8, 32], strides = [1, 1]} : vector<16x32xf32> to vector<8x32xf32>
    %cst_12 = arith.constant dense<0.000000e+00> : vector<8x8xf32>
    %14 = tpu.matmul %12, %13, %cst_12 {dimension_numbers = #tpu.dot_dimension_numbers<[1], [1], [0], [0], [0, 0, 1, 0], [], []>, precision = #tpu.contract_precision<fp32>} : vector<8x32xf32>, vector<8x32xf32>, vector<8x8xf32> -> vector<8x8xf32>
    %cst_13 = arith.constant dense<0xFF800000> : vector<8xf32>
    %15 = vector.multi_reduction <maximumf>, %14, %cst_13 [1] : vector<8x8xf32> to vector<8xf32>
    %16 = vector.shape_cast %15 : vector<8xf32> to vector<8x1xf32>
    %17 = vector.broadcast %16 : vector<8x1xf32> to vector<8x8xf32>
    %18 = arith.subf %14, %17 : vector<8x8xf32>
    %19 = math.exp %18 : vector<8x8xf32>
    %cst_14 = arith.constant dense<0.000000e+00> : vector<8xf32>
    %20 = vector.multi_reduction <add>, %19, %cst_14 [1] : vector<8x8xf32> to vector<8xf32>
    %21 = vector.shape_cast %20 : vector<8xf32> to vector<8x1xf32>
    %cst_15 = arith.constant 1.000000e+00 : f32
    %22 = vector.broadcast %cst_15 : f32 to vector<8x1xf32>
    %23 = arith.divf %22, %21 : vector<8x1xf32>
    %24 = vector.broadcast %23 : vector<8x1xf32> to vector<8x8xf32>
    %25 = arith.mulf %19, %24 : vector<8x8xf32>
    %c0_16 = arith.constant 0 : index
    %c0_17 = arith.constant 0 : index
    %c0_18 = arith.constant 0 : index
    %26 = vector.load %arg6[%c0_16, %c0_17, %c0_18] : memref<2x8x8xf32, #tpu.memory_space<vmem>>, vector<1x8x8xf32>
    %27 = vector.shape_cast %26 : vector<1x8x8xf32> to vector<8x8xf32>
    %28 = vector.shape_cast %25 : vector<8x8xf32> to vector<1x8x8xf32>
    tpu.vector_store %arg6[%c0_16, %c0_17, %c0_18], %28 {strides = array<i32>} : memref<2x8x8xf32, #tpu.memory_space<vmem>>, vector<1x8x8xf32>,
    %29 = vector.extract_strided_slice %5 {offsets = [8, 0], sizes = [8, 32], strides = [1, 1]} : vector<16x32xf32> to vector<8x32xf32>
    %30 = vector.extract_strided_slice %11 {offsets = [8, 0], sizes = [8, 32], strides = [1, 1]} : vector<16x32xf32> to vector<8x32xf32>
    %cst_19 = arith.constant dense<0.000000e+00> : vector<8x8xf32>
    %31 = tpu.matmul %29, %30, %cst_19 {dimension_numbers = #tpu.dot_dimension_numbers<[1], [1], [0], [0], [0, 0, 1, 0], [], []>, precision = #tpu.contract_precision<fp32>} : vector<8x32xf32>, vector<8x32xf32>, vector<8x8xf32> -> vector<8x8xf32>
    %cst_20 = arith.constant dense<0xFF800000> : vector<8xf32>
    %32 = vector.multi_reduction <maximumf>, %31, %cst_20 [1] : vector<8x8xf32> to vector<8xf32>
    %33 = vector.shape_cast %32 : vector<8xf32> to vector<8x1xf32>
    %34 = vector.broadcast %33 : vector<8x1xf32> to vector<8x8xf32>
    %35 = arith.subf %31, %34 : vector<8x8xf32>
    %36 = math.exp %35 : vector<8x8xf32>
    %cst_21 = arith.constant dense<0.000000e+00> : vector<8xf32>
    %37 = vector.multi_reduction <add>, %36, %cst_21 [1] : vector<8x8xf32> to vector<8xf32>
    %38 = vector.shape_cast %37 : vector<8xf32> to vector<8x1xf32>
    %cst_22 = arith.constant 1.000000e+00 : f32
    %39 = vector.broadcast %cst_22 : f32 to vector<8x1xf32>
    %40 = arith.divf %39, %38 : vector<8x1xf32>
    %41 = vector.broadcast %40 : vector<8x1xf32> to vector<8x8xf32>
    %42 = arith.mulf %36, %41 : vector<8x8xf32>
    %c1 = arith.constant 1 : index
    %c0_23 = arith.constant 0 : index
    %c0_24 = arith.constant 0 : index
    %43 = vector.load %arg6[%c1, %c0_23, %c0_24] : memref<2x8x8xf32, #tpu.memory_space<vmem>>, vector<1x8x8xf32>
    %44 = vector.shape_cast %43 : vector<1x8x8xf32> to vector<8x8xf32>
    %45 = vector.shape_cast %42 : vector<8x8xf32> to vector<1x8x8xf32>
    tpu.vector_store %arg6[%c1, %c0_23, %c0_24], %45 {strides = array<i32>} : memref<2x8x8xf32, #tpu.memory_space<vmem>>, vector<1x8x8xf32>,
    return
  }
  func.func @transform_0(%arg0: i32) -> (i32, i32) {
    %c0_i32 = arith.constant 0 : i32
    %c0_i32_0 = arith.constant 0 : i32
    return %arg0, %c0_i32 : i32, i32
  }
  func.func @transform_1(%arg0: i32) -> (i32, i32) {
    %c0_i32 = arith.constant 0 : i32
    %c0_i32_0 = arith.constant 0 : i32
    %c0_i32_1 = arith.constant 0 : i32
    return %c0_i32, %c0_i32_0 : i32, i32
  }
  func.func @transform_2(%arg0: i32) -> (i32, i32) {
    %c0_i32 = arith.constant 0 : i32
    %c0_i32_0 = arith.constant 0 : i32
    %c0_i32_1 = arith.constant 0 : i32
    return %c0_i32, %c0_i32_0 : i32, i32
  }
  func.func @transform_3(%arg0: i32) -> (i32, i32) {
    %c0_i32 = arith.constant 0 : i32
    %c0_i32_0 = arith.constant 0 : i32
    %c0_i32_1 = arith.constant 0 : i32
    return %c0_i32, %c0_i32_0 : i32, i32
  }
  func.func @transform_4(%arg0: i32) -> (i32, i32) {
    %c0_i32 = arith.constant 0 : i32
    %c0_i32_0 = arith.constant 0 : i32
    %c0_i32_1 = arith.constant 0 : i32
    return %c0_i32, %c0_i32_0 : i32, i32
  }
  func.func @transform_5(%arg0: i32) -> (i32, i32, i32) {
    %c0_i32 = arith.constant 0 : i32
    %c0_i32_0 = arith.constant 0 : i32
    %c0_i32_1 = arith.constant 0 : i32
    return %arg0, %c0_i32, %c0_i32_0 : i32, i32, i32
  }
}

</mosaic_0001>

<bundles_post_ra>
// kernel: tpu_custom_call.1
= control target key start
LH: loop header
LB: loop body
LE: loop exit
PB: predicated region body
PF: predicated region fallthrough
CT: control target
= control target key end

     0   :  { %10 = vsyncpa [#allocation3], 0  ;;  %s2941_s0 = inlined_call_operand.hbm [shape: f32[16,32], index: 0, kind: input, shape index: {}]   ;;  %s2942_s1 = inlined_call_operand.hbm [shape: f32[32,32], index: 1, kind: input, shape index: {}]   ;;  %s2943_s2 = inlined_call_operand.vmem [shape: f32[1,32], index: 2, kind: input, shape index: {}]   ;;  %s2944_s3 = inlined_call_operand.hbm [shape: f32[32,32], index: 3, kind: input, shape index: {}]   ;;  %s2945_s4 = inlined_call_operand.vmem [shape: f32[1,32], index: 4, kind: input, shape index: {}]   ;;  %s2946_s5 = inlined_call_operand.hbm [shape: f32[2,8,8], index: 5, kind: output, shape index: {}]  }
   0x1   :  { %11 = vsyncpa [#allocation6], 0 }
   0x2   :  { %12 = vsyncpa [#allocation4], 0  ;;  %s2639_s18 = smov [#allocation5]   ;;  %s2640_s20 = smov [#allocation2]  }
   0x3   :  { %s30_s19 = sshll.u32 %s2639_s18, 4  ;;  %s18_s21 = sshll.u32 %s2640_s20, 4  ;;  %s31_s19 = int_to_ptr.vmem [resolvable:$true] %s30_s19  ;;  %s2677_s21 = int_to_ptr.vmem [resolvable:$true] %s18_s21 }
   0x4   :  { %s2545_s24 = scalar_lea.hbm %s2942_s1, 512 }
   0x5   :  { %p2546_p0 = scmp.ne.s32.totalorder %s2942_s1, %s2545_s24  ;;  %p2549_p1 = scmp.lt.u32.totalorder %s2545_s24, %s2942_s1 }
   0x7   :  { %p2551_p2 = pnand %p2549_p1, %p2546_p0 }
   0x9   :  { %2554 = shalt.err (!%p2551_p2)
}
   0xa   :  { %s2555_s29 = scalar_lea.vmem %s31_s19, 512  ;;  %p2560_p4 = scmp.lt.s32.totalorder %s31_s19, %s31_s19 }
   0xb   :  { %p2556_p3 = scmp.ne.s32.totalorder %s31_s19, %s2555_s29  ;;  %p2561_p5 = scmp.lt.s32.totalorder %s2555_s29, %s2555_s29 }
   0xd   :  { %p2562_p6 = por %p2561_p5, %p2560_p4 }
   0xf   :  { %p2563_p7 = pnand %p2562_p6, %p2556_p3 }
  0x11   :  { %2566 = shalt.err (!%p2563_p7)
}
  0x12   :  { %s2641_s30 = smov 128   ;;  %s2642_s6 = smov 8  }
  0x13   :  { %36 = dma.hbm_to_vmem [thread:$0]  %s2942_s1, 512, %s31_s19, [#allocation6], %s2641_s30, %s2641_s30, %s2642_s6  }
  0x14   :  { %s2567_s11 = scalar_lea.hbm %s2941_s0, 256 }
  0x15   :  { %p2568_p8 = scmp.ne.s32.totalorder %s2941_s0, %s2567_s11  ;;  %p2571_p9 = scmp.lt.u32.totalorder %s2567_s11, %s2941_s0 }
  0x17   :  { %p2573_p10 = pnand %p2571_p9, %p2568_p8 }
  0x19   :  { %2576 = shalt.err (!%p2573_p10)
}
  0x1a   :  { %s2577_s16 = scalar_lea.vmem %s2677_s21, 256  ;;  %p2582_p12 = scmp.lt.s32.totalorder %s2677_s21, %s2677_s21 }
  0x1b   :  { %p2578_p11 = scmp.ne.s32.totalorder %s2677_s21, %s2577_s16  ;;  %p2583_p13 = scmp.lt.s32.totalorder %s2577_s16, %s2577_s16 }
  0x1d   :  { %p2584_p0 = por %p2583_p13, %p2582_p12 }
  0x1f   :  { %p2585_p1 = pnand %p2584_p0, %p2578_p11 }
  0x21   :  { %2588 = shalt.err (!%p2585_p1)
}
  0x22   :  { %24 = dma.hbm_to_vmem [thread:$0]  %s2941_s0, 256, %s2677_s21, [#allocation3], %s2641_s30, %s2641_s30, %s2642_s6  }
  0x23   :  { %s2643_s18 = smov [#allocation7]   ;;  %s2589_s23 = scalar_lea.hbm %s2944_s3, 512 }
  0x24   :  { %s44_s19 = sshll.u32 %s2643_s18, 4  ;;  %p2590_p2 = scmp.ne.s32.totalorder %s2944_s3, %s2589_s23  ;;  %s45_s19 = int_to_ptr.vmem [resolvable:$true] %s44_s19 }
  0x25   :  { %p2593_p3 = scmp.lt.u32.totalorder %s2589_s23, %s2944_s3 }
  0x27   :  { %p2595_p4 = pnand %p2593_p3, %p2590_p2 }
  0x29   :  { %2598 = shalt.err (!%p2595_p4)
}
  0x2a   :  { %s2599_s28 = scalar_lea.vmem %s45_s19, 512  ;;  %p2604_p6 = scmp.lt.s32.totalorder %s45_s19, %s45_s19 }
  0x2b   :  { %p2600_p5 = scmp.ne.s32.totalorder %s45_s19, %s2599_s28  ;;  %p2605_p7 = scmp.lt.s32.totalorder %s2599_s28, %s2599_s28 }
  0x2d   :  { %p2606_p8 = por %p2605_p7, %p2604_p6 }
  0x2f   :  { %p2607_p9 = pnand %p2606_p8, %p2600_p5 }
  0x31   :  { %2610 = shalt.err (!%p2607_p9)
}
  0x32   :  { %50 = dma.hbm_to_vmem [thread:$0]  %s2944_s3, 512, %s45_s19, [#allocation6], %s2641_s30, %s2641_s30, %s2642_s6  }
  0x33   :  { %2633 = dma.done.wait [#allocation3], 256  }
  0x34   :  { %2634 = vsyncadd [#allocation3], 4294967040 }
  0x35   :  { %2635 = dma.done.wait [#allocation6], 1024  }
  0x36   :  { %2636 = vsyncadd [#allocation6], 4294966272  ;;  %v64_v0 = vld [vmem:[#allocation5] sm:$0xff]  ;;  %v65_v1 = vld [vmem:[#allocation5 + $0x8] sm:$0xff]  ;;  %vm75_vm0 = vcmask 261120   ;;  %vm2645_vm1 = vmmov 0  }
  0x37   :  { %v610_v2 = vld [vmem:[#allocation7] sm:$0xff]  ;;  %v83_v3 = vand.u32 4294901760, %v64_v0  ;;  %v86_v4 = vand.u32 4294901760, %v65_v1  ;;  %v611_v5 = vld [vmem:[#allocation7 + $0x8] sm:$0xff]  ;;  %v66_v7 = vld [vmem:[#allocation5 + $0x10] sm:$0xff]  ;;  %vm1601_vm2 = vcmask 64512  }
  0x38   :  { %v622_v6 = vand.u32 4294901760, %v610_v2  ;;  %v67_v8 = vld [vmem:[#allocation5 + $0x18] sm:$0xff]  ;;  %v625_v9 = vand.u32 4294901760, %v611_v5  ;;  %v89_v10 = vand.u32 4294901760, %v66_v7  ;;  %v612_v12 = vld [vmem:[#allocation7 + $0x10] sm:$0xff] }
  0x39   :  { %v92_v11 = vand.u32 4294901760, %v67_v8  ;;  %v613_v13 = vld [vmem:[#allocation7 + $0x18] sm:$0xff]  ;;  %v62_v14 = vld [vmem:[#allocation2] sm:$0xff]  ;;  %v2729_v15 = vpack.c.bf16 %v86_v4, %v83_v3  ;;  %v628_v16 = vand.u32 4294901760, %v612_v12  ;;  %v2744_v26 = vsub.f32 %v64_v0, %v83_v3 }
  0x3a   :  { %v631_v17 = vand.u32 4294901760, %v613_v13  ;;  %v77_v18 = vsel %vm75_vm0, %v62_v14, 0  ;;  %v63_v19 = vld [vmem:[#allocation2 + $0x8] sm:$0xff]  ;;  %v2732_v20 = vpack.c.bf16 %v625_v9, %v622_v6  ;;  %v2746_v27 = vsub.f32 %v65_v1, %v86_v4 }
  0x3b   :  { %v2734_v21 = vpack.c.bf16 %v92_v11, %v89_v10  ;;  %v2736_v22 = vand.u32 4294901760, %v77_v18  ;;  %v80_v23 = vsel %vm75_vm0, %v63_v19, 0  ;;  %2390 = vmatprep.subr.bf16.mxu0 %v2729_v15  ;;  %v2753_v29 = vsub.f32 %v610_v2, %v622_v6  ;;  %v2100_v19 = vld [vmem:[%s2945_s4] ss:$0 sm:$0xff] }
  0x3c   :  { %v2740_v24 = vpack.c.bf16 %v631_v17, %v628_v16  ;;  %v2742_v25 = vand.u32 4294901760, %v80_v23  ;;  %2438 = vmatprep.subr.bf16.mxu1 %v2732_v20  ;;  %2392 = vmatpush3.bf16.msra.mxu0 %v2729_v15  ;;  %v2755_v30 = vsub.f32 %v611_v5, %v625_v9  ;;  %v174_v32 = vand.u32 4294901760, %v2744_v26 }
  0x3d   :  { %v2751_v28 = vsub.f32 %v77_v18, %v2736_v22  ;;  %2440 = vmatpush3.bf16.msra.mxu1 %v2732_v20  ;;  %2394 = vmatprep.subr.bf16.mxu0 %v2734_v21  ;;  %v181_v33 = vand.u32 4294901760, %v2746_v27  ;;  %v2764_v34 = vsub.f32 %v66_v7, %v89_v10  ;;  %v713_v36 = vand.u32 4294901760, %v2753_v29 }
  0x3e   :  { %v2760_v31 = vsub.f32 %v80_v23, %v2742_v25  ;;  %2442 = vmatprep.subr.bf16.mxu1 %v2740_v24  ;;  %v720_v37 = vand.u32 4294901760, %v2755_v30  ;;  %v2772_v38 = vsub.f32 %v67_v8, %v92_v11  ;;  %v175_v40 = vsub.f32 %v2744_v26, %v174_v32 }
  0x3f   :  { %v2768_v35 = vand.u32 4294901760, %v2751_v28  ;;  %v182_v41 = vsub.f32 %v2746_v27, %v181_v33  ;;  %v188_v42 = vand.u32 4294901760, %v2764_v34  ;;  %v714_v44 = vsub.f32 %v2753_v29, %v713_v36 }
  0x40   :  { %v2775_v39 = vand.u32 4294901760, %v2760_v31  ;;  %2396 = vmatpush3.bf16.msra.mxu0 %v2734_v21  ;;  %v721_v45 = vsub.f32 %v2755_v30, %v720_v37  ;;  %v195_v46 = vand.u32 4294901760, %v2772_v38  ;;  %v176_v48 = vand.u32 4294901760, %v175_v40 }
  0x41   :  { %v154_v43 = vsub.f32 %v2751_v28, %v2768_v35  ;;  %2444 = vmatpush3.bf16.msra.mxu1 %v2740_v24  ;;  %v183_v49 = vand.u32 4294901760, %v182_v41  ;;  %v189_v50 = vsub.f32 %v2764_v34, %v188_v42  ;;  %v715_v52 = vand.u32 4294901760, %v714_v44 }
  0x42   :  { %v164_v47 = vsub.f32 %v2760_v31, %v2775_v39  ;;  %v722_v53 = vand.u32 4294901760, %v721_v45  ;;  %v196_v54 = vsub.f32 %v2772_v38, %v195_v46  ;;  %v2803_v58 = vsub.f32 %v612_v12, %v628_v16 }
  0x43   :  { %v155_v51 = vand.u32 4294901760, %v154_v43  ;;  %v2397_v56 = vpack.c.bf16 %v183_v49, %v176_v48  ;;  %v190_v57 = vand.u32 4294901760, %v189_v50  ;;  %v733_v61 = vsub.f32 %v613_v13, %v631_v17 }
  0x44   :  { %v165_v55 = vand.u32 4294901760, %v164_v47  ;;  %v2445_v59 = vpack.c.bf16 %v722_v53, %v715_v52  ;;  %v197_v60 = vand.u32 4294901760, %v196_v54  ;;  %v727_v62 = vand.u32 4294901760, %v2803_v58 }
  0x45   :  { %2205 = vmatprep.mubr.f32.mxu0 %v155_v51  ;;  %2271 = vmatprep.mubr.f32.mxu1 %v155_v51  ;;  %v734_v0 = vand.u32 4294901760, %v733_v61  ;;  %v2405_v3 = vpack.c.bf16 %v2746_v27, %v2744_v26  ;;  %v2453_v7 = vpack.c.bf16 %v2755_v30, %v2753_v29  ;;  %v2409_v8 = vpack.c.bf16 %v2772_v38, %v2764_v34 }
  0x46   :  { %2206 = vmatmul.mubr.f32.vlgmr.msra.gmra.mrb[0].mxu0 %v165_v55  ;;  %2398 = vmatprep.subr.bf16.mxu0 %v2397_v56  ;;  %v2401_v63 = vpack.c.bf16 %v197_v60, %v190_v57  ;;  %v728_v1 = vsub.f32 %v2803_v58, %v727_v62  ;;  %v2457_v9 = vpack.c.bf16 %v733_v61, %v2803_v58  ;;  %v2644_v14 = vmov 0.0  }
  0x47   :  { %2272 = vmatmul.mubr.f32.vlgmr.msra.gmra.mrb[0].mxu1 %v165_v55  ;;  %2446 = vmatprep.subr.bf16.mxu1 %v2445_v59  ;;  %v735_v2 = vsub.f32 %v733_v61, %v734_v0  ;;  %v2421_v10 = vpack.c.bf16 %v181_v33, %v174_v32  ;;  %v2469_v11 = vpack.c.bf16 %v720_v37, %v713_v36 }
  0x48   :  { %2400 = vmatpush3.bf16.msra.mxu0 %v2397_v56  ;;  %2448 = vmatpush3.bf16.msra.mxu1 %v2445_v59  ;;  %v729_v4 = vand.u32 4294901760, %v728_v1  ;;  %v2425_v12 = vpack.c.bf16 %v195_v46, %v188_v42  ;;  %v2473_v13 = vpack.c.bf16 %v734_v0, %v727_v62 }
  0x49   :  { %2402 = vmatprep.subr.bf16.mxu0 %v2401_v63  ;;  %2216 = vmatprep.mubr.f32.mxu0 %v2736_v22  ;;  %v736_v5 = vand.u32 4294901760, %v735_v2 }
  0x4a   :  { %2282 = vmatprep.mubr.f32.mxu1 %v2736_v22 }
  0x4b   :  { %v2449_v6 = vpack.c.bf16 %v736_v5, %v729_v4 }
  0x4c   :  { %2404 = vmatpush3.bf16.msra.mxu0 %v2401_v63 }
  0x4d   :  { %2406 = vmatprep.subr.bf16.mxu0 %v2405_v3  ;;  %2450 = vmatprep.subr.bf16.mxu1 %v2449_v6 }
  0x4e   :  { %2452 = vmatpush3.bf16.msra.mxu1 %v2449_v6 }
  0x4f   :  { %2217 = vmatmul.mubr.f32.vlgmr.msra.gmra.mrb[0].mxu0 %v2742_v25  ;;  %2454 = vmatprep.subr.bf16.mxu1 %v2453_v7 }
  0x50   :  { %2408 = vmatpush3.bf16.msra.mxu0 %v2405_v3  ;;  %2227 = vmatprep.mubr.f32.mxu0 %v2751_v28 }
  0x51   :  { %2410 = vmatprep.subr.bf16.mxu0 %v2409_v8  ;;  %2283 = vmatmul.mubr.f32.vlgmr.msra.gmra.mrb[0].mxu1 %v2742_v25 }
  0x52   :  { %2456 = vmatpush3.bf16.msra.mxu1 %v2453_v7  ;;  %2293 = vmatprep.mubr.f32.mxu1 %v2751_v28 }
  0x53   :  { %2458 = vmatprep.subr.bf16.mxu1 %v2457_v9 }
  0x54   :  { %2412 = vmatpush3.bf16.msra.mxu0 %v2409_v8 }
  0x55   :  { %2414 = vmatprep.subr.bf16.mxu0 %v2729_v15 }
  0x56   :  { %2460 = vmatpush3.bf16.msra.mxu1 %v2457_v9 }
  0x57   :  { %2228 = vmatmul.mubr.f32.vlgmr.msra.gmra.mrb[0].mxu0 %v2760_v31  ;;  %2462 = vmatprep.subr.bf16.mxu1 %v2732_v20 }
  0x58   :  { %2416 = vmatpush3.bf16.msra.mxu0 %v2729_v15  ;;  %2238 = vmatprep.mubr.f32.mxu0 %v2768_v35 }
  0x59   :  { %2418 = vmatprep.subr.bf16.mxu0 %v2734_v21  ;;  %2294 = vmatmul.mubr.f32.vlgmr.msra.gmra.mrb[0].mxu1 %v2760_v31 }
  0x5a   :  { %2464 = vmatpush3.bf16.msra.mxu1 %v2732_v20  ;;  %2304 = vmatprep.mubr.f32.mxu1 %v2768_v35 }
  0x5b   :  { %2466 = vmatprep.subr.bf16.mxu1 %v2740_v24 }
  0x5c   :  { %2420 = vmatpush3.bf16.msra.mxu0 %v2734_v21 }
  0x5d   :  { %2422 = vmatprep.subr.bf16.mxu0 %v2421_v10 }
  0x5e   :  { %2468 = vmatpush3.bf16.msra.mxu1 %v2740_v24 }
  0x5f   :  { %2239 = vmatmul.mubr.f32.vlgmr.msra.gmra.mrb[0].mxu0 %v2775_v39  ;;  %2470 = vmatprep.subr.bf16.mxu1 %v2469_v11 }
  0x60   :  { %2424 = vmatpush3.bf16.msra.mxu0 %v2421_v10  ;;  %2249 = vmatprep.mubr.f32.mxu0 %v2736_v22 }
  0x61   :  { %2426 = vmatprep.subr.bf16.mxu0 %v2425_v12  ;;  %2305 = vmatmul.mubr.f32.vlgmr.msra.gmra.mrb[0].mxu1 %v2775_v39 }
  0x62   :  { %2472 = vmatpush3.bf16.msra.mxu1 %v2469_v11  ;;  %2315 = vmatprep.mubr.f32.mxu1 %v2736_v22 }
  0x63   :  { %2474 = vmatprep.subr.bf16.mxu1 %v2473_v13 }
  0x64   :  { %2428 = vmatpush3.bf16.msra.mxu0 %v2425_v12 }
  0x65   :  { %2430 = vmatprep.subr.bf16.mxu0 %v2729_v15 }
  0x66   :  { %2476 = vmatpush3.bf16.msra.mxu1 %v2473_v13 }
  0x67   :  { %2250 = vmatmul.mubr.f32.vlgmr.msra.gmra.mrb[0].mxu0 %v2742_v25  ;;  %2478 = vmatprep.subr.bf16.mxu1 %v2732_v20 }
  0x68   :  { %2432 = vmatpush3.bf16.msra.mxu0 %v2729_v15  ;;  %2260 = vmatprep.mubr.f32.mxu0 %v2736_v22  ;;  %v2099_v15 = vld [vmem:[%s2943_s2] ss:$0 sm:$0xff]  ;;  %s2646_s2 = smov [#allocation8]  }
  0x69   :  { %2434 = vmatprep.subr.bf16.mxu0 %v2734_v21  ;;  %2316 = vmatmul.mubr.f32.vlgmr.msra.gmra.mrb[0].mxu1 %v2742_v25  ;;  %s2086_s4 = sshll.u32 %s2646_s2, 4  ;;  %s2087_s4 = int_to_ptr.vmem [resolvable:$true] %s2086_s4 }
  0x6a   :  { %2480 = vmatpush3.bf16.msra.mxu1 %v2732_v20  ;;  %2326 = vmatprep.mubr.f32.mxu1 %v2736_v22  ;;  %s2611_s9 = scalar_lea.vmem %s2087_s4, 256  ;;  %p2616_p11 = scmp.lt.s32.totalorder %s2087_s4, %s2087_s4 }
  0x6b   :  { %2482 = vmatprep.subr.bf16.mxu1 %v2740_v24  ;;  %p2612_p10 = scmp.ne.s32.totalorder %s2087_s4, %s2611_s9  ;;  %p2617_p12 = scmp.lt.s32.totalorder %s2611_s9, %s2611_s9 }
  0x6c   :  { %2436 = vmatpush3.bf16.msra.mxu0 %v2734_v21 }
  0x6d   :  { %2329 = vmatprep.subr.mxu0 %v2644_v14  ;;  %p2618_p13 = por %p2617_p12, %p2616_p11 }
  0x6e   :  { %2484 = vmatpush3.bf16.msra.mxu1 %v2740_v24 }
  0x6f   :  { %2261 = vmatmul.mubr.f32.vlgmr.msra.gmra.mrb[0].mxu0 %v2742_v25  ;;  %2359 = vmatprep.subr.mxu1 %v2644_v14  ;;  %p2619_p0 = pnand %p2618_p13, %p2612_p10 }
  0x70   :  { %2331 = vmatprep.mubr.msk.f32.mxu0 %vm2645_vm1, %v2644_v14 }
  0x71   :  { %2327 = vmatmul.mubr.f32.vlgmr.msra.gmra.mrb[0].mxu1 %v2742_v25 }
  0x72   :  { %2361 = vmatprep.mubr.msk.f32.mxu1 %vm2645_vm1, %v2644_v14 }
 0x142   :  { %v2262_v16 = vpop.f32.mrb[0].mxu0 }
 0x143   :  { %v2485_v17 = vadd.f32 %v2262_v16, %v2099_v15  ;;  %v600_v18 = vpop.f32.mrb[1].mxu0 }
 0x144   :  { %v2486_v20 = vadd.f32 %v2099_v15, %v600_v18  ;;  %v2328_v23 = vpop.f32.mrb[0].mxu1 }
 0x145   :  { %v1616_v21 = vsel %vm75_vm0, %v2485_v17, 0  ;;  %v2487_v25 = vadd.f32 %v2328_v23, %v2100_v19  ;;  %v1139_v27 = vpop.f32.mrb[1].mxu1 }
 0x146   :  { %v2875_v22 = vand.u32 4294901760, %v1616_v21  ;;  %v1150_v24 = vsel %vm75_vm0, %v2486_v20, 0  ;;  %v2488_v29 = vadd.f32 %v2100_v19, %v1139_v27 }
 0x147   :  { %v2878_v26 = vand.u32 4294901760, %v1150_v24  ;;  %v1619_v30 = vsel %vm75_vm0, %v2487_v25, 0 }
 0x148   :  { %v1688_v28 = vsub.f32 %v1616_v21, %v2875_v22  ;;  %v1622_v33 = vand.u32 4294901760, %v1619_v30  ;;  %v1153_v34 = vsel %vm75_vm0, %v2488_v29, 0 }
 0x149   :  { %v1222_v31 = vsub.f32 %v1150_v24, %v2878_v26  ;;  %v1156_v36 = vand.u32 4294901760, %v1153_v34 }
 0x14a   :  { %v1689_v32 = vand.u32 4294901760, %v1688_v28  ;;  %v1699_v37 = vsub.f32 %v1619_v30, %v1622_v33  ;;  %2360 = vmatpush3.xpose.msra.mxu1 %v1622_v33 }
 0x14b   :  { %v1223_v35 = vand.u32 4294901760, %v1222_v31  ;;  %v1233_v39 = vsub.f32 %v1153_v34, %v1156_v36  ;;  %2330 = vmatpush3.xpose.msra.mxu0 %v1156_v36  ;;  %2364 = vmatprep.subr.mxu1 %v2644_v14 }
 0x14c   :  { %v1690_v38 = vsub.f32 %v1688_v28, %v1689_v32  ;;  %v1700_v41 = vand.u32 4294901760, %v1699_v37  ;;  %2334 = vmatprep.subr.mxu0 %v2644_v14 }
 0x14d   :  { %v1224_v40 = vsub.f32 %v1222_v31, %v1223_v35  ;;  %v1234_v43 = vand.u32 4294901760, %v1233_v39 }
 0x14e   :  { %v1691_v42 = vand.u32 4294901760, %v1690_v38  ;;  %v1701_v45 = vsub.f32 %v1699_v37, %v1700_v41 }
 0x14f   :  { %v1225_v44 = vand.u32 4294901760, %v1224_v40  ;;  %v1235_v46 = vsub.f32 %v1233_v39, %v1234_v43 }
 0x150   :  { %2362 = vmatmul.mubr.f32.vlgmr.msra.gmra.mrb[2].mxu1 %v1691_v42  ;;  %v1702_v47 = vand.u32 4294901760, %v1701_v45 }
 0x151   :  { %2332 = vmatmul.mubr.f32.vlgmr.msra.gmra.mrb[2].mxu0 %v1225_v44  ;;  %2366 = vmatprep.mubr.msk.f32.mxu1 %vm2645_vm1, %v2644_v14  ;;  %v1236_v48 = vand.u32 4294901760, %v1235_v46 }
 0x152   :  { %2336 = vmatprep.mubr.msk.f32.mxu0 %vm2645_vm1, %v2644_v14  ;;  %2365 = vmatpush3.xpose.msra.mxu1 %v1702_v47 }
 0x153   :  { %2335 = vmatpush3.xpose.msra.mxu0 %v1236_v48  ;;  %2369 = vmatprep.subr.mxu1 %v2644_v14 }
 0x154   :  { %2339 = vmatprep.subr.mxu0 %v2644_v14 }
 0x158   :  { %2367 = vmatmul.mubr.f32.vlgmr.msra.gmra.mrb[2].mxu1 %v2875_v22 }
 0x159   :  { %2370 = vmatpush3.xpose.msra.mxu1 %v1699_v37  ;;  %2337 = vmatmul.mubr.f32.vlgmr.msra.gmra.mrb[2].mxu0 %v2878_v26 }
 0x15a   :  { %2340 = vmatpush3.xpose.msra.mxu0 %v1233_v39  ;;  %2371 = vmatprep.mubr.msk.f32.mxu1 %vm2645_vm1, %v2644_v14 }
 0x15b   :  { %2374 = vmatprep.subr.mxu1 %v2644_v14  ;;  %2341 = vmatprep.mubr.msk.f32.mxu0 %vm2645_vm1, %v2644_v14 }
 0x15c   :  { %2344 = vmatprep.subr.mxu0 %v2644_v14 }
 0x160   :  { %2372 = vmatmul.mubr.f32.vlgmr.msra.gmra.mrb[2].mxu1 %v1688_v28 }
 0x161   :  { %2375 = vmatpush3.xpose.msra.mxu1 %v1622_v33  ;;  %2342 = vmatmul.mubr.f32.vlgmr.msra.gmra.mrb[2].mxu0 %v1222_v31 }
 0x162   :  { %2345 = vmatpush3.xpose.msra.mxu0 %v1156_v36  ;;  %2376 = vmatprep.mubr.msk.f32.mxu1 %vm2645_vm1, %v2644_v14 }
 0x163   :  { %2379 = vmatprep.subr.mxu1 %v2644_v14  ;;  %2346 = vmatprep.mubr.msk.f32.mxu0 %vm2645_vm1, %v2644_v14 }
 0x164   :  { %2349 = vmatprep.subr.mxu0 %v2644_v14 }
 0x168   :  { %2377 = vmatmul.mubr.f32.vlgmr.msra.gmra.mrb[2].mxu1 %v1689_v32 }
 0x169   :  { %2380 = vmatpush3.xpose.msra.mxu1 %v1700_v41  ;;  %2347 = vmatmul.mubr.f32.vlgmr.msra.gmra.mrb[2].mxu0 %v1223_v35 }
 0x16a   :  { %2350 = vmatpush3.xpose.msra.mxu0 %v1234_v43  ;;  %2381 = vmatprep.mubr.msk.f32.mxu1 %vm2645_vm1, %v2644_v14 }
 0x16b   :  { %2384 = vmatprep.subr.mxu1 %v2644_v14  ;;  %2351 = vmatprep.mubr.msk.f32.mxu0 %vm2645_vm1, %v2644_v14 }
 0x16c   :  { %2354 = vmatprep.subr.mxu0 %v2644_v14 }
 0x170   :  { %2382 = vmatmul.mubr.f32.vlgmr.msra.gmra.mrb[2].mxu1 %v2875_v22 }
 0x171   :  { %2385 = vmatpush3.xpose.msra.mxu1 %v1622_v33  ;;  %2352 = vmatmul.mubr.f32.vlgmr.msra.gmra.mrb[2].mxu0 %v2878_v26 }
 0x172   :  { %2355 = vmatpush3.xpose.msra.mxu0 %v1156_v36  ;;  %2386 = vmatprep.mubr.msk.f32.mxu1 %vm2645_vm1, %v2644_v14 }
 0x173   :  { %2356 = vmatprep.mubr.msk.f32.mxu0 %vm2645_vm1, %v2644_v14 }
 0x178   :  { %2387 = vmatmul.mubr.f32.vlgmr.msra.gmra.mrb[2].mxu1 %v2875_v22 }
 0x179   :  { %2357 = vmatmul.mubr.f32.vlgmr.msra.gmra.mrb[2].mxu0 %v2878_v26 }
 0x24b   :  { %v2063_v49 = vpop.f32.mrb[2].mxu1 }
 0x24c   :  { %v1597_v50 = vpop.f32.mrb[2].mxu0  ;;  %v2388_v51 = vpop.f32.mrb[3].mxu1  ;;  %v2067_v54 = vsel %vm1601_vm2, %v2063_v49, -inf }
 0x24d   :  { %v2358_v52 = vpop.f32.mrb[3].mxu0  ;;  %v1602_v53 = vsel %vm1601_vm2, %v1597_v50, -inf }
 0x24e   :  { %1603 = vmax.xlane.f32.xlu0 %v1602_v53 }
 0x252   :  { %2068 = vmax.xlane.f32.xlu0 %v2067_v54 }
 0x2db   :  { %v1604_v55 = vpop.xlane.xlu0 %1603 }
 0x2dc   :  { %v1605_v56 = vsub.f32 %v1597_v50, %v1604_v55 }
 0x2de   :  { %v1606_v57 = vmul.f32 1.442695, %v1605_v56 }
 0x2df   :  { %v2069_v58 = vpop.xlane.xlu0 %2068 }
 0x2e0   :  { %2537 = vpow2.f32 %v1606_v57  ;;  %v2070_v59 = vsub.f32 %v2063_v49, %v2069_v58 }
 0x2e2   :  { %v2071_v60 = vmul.f32 1.442695, %v2070_v59 }
 0x2e4   :  { %2539 = vpow2.f32 %v2071_v60 }
 0x2ea   :  { %v2538_v61 = vpop.eup %2537 }
 0x2eb   :  { %v1608_v62 = vsel %vm1601_vm2, %v2538_v61, 0.0 }
 0x2ec   :  { %1609 = vadd.xlane.f32.xlu1 %v1608_v62 }
 0x2ee   :  { %v2540_v63 = vpop.eup %2539 }
 0x2ef   :  { %v2073_v0 = vsel %vm1601_vm2, %v2540_v63, 0.0 }
 0x2f0   :  { %2074 = vadd.xlane.f32.xlu1 %v2073_v0 }
 0x379   :  { %v1610_v1 = vpop.xlane.xlu1 %1609 }
 0x37a   :  { %2541 = vrcp.f32 %v1610_v1 }
 0x37d   :  { %v2075_v2 = vpop.xlane.xlu1 %2074 }
 0x37e   :  { %2543 = vrcp.f32 %v2075_v2 }
 0x384   :  { %v2542_v3 = vpop.eup %2541 }
 0x385   :  { %v1613_v4 = vmul.f32 %v2542_v3, %v2538_v61 }
 0x387   :  { %1614 = vst.msk [vmem:[#allocation8] sm:$0xff] %vm1601_vm2, %v1613_v4 }
 0x388   :  { %v2544_v5 = vpop.eup %2543 }
 0x389   :  { %v2078_v6 = vmul.f32 %v2544_v5, %v2540_v63 }
 0x38b   :  { %2080 = vst.msk [vmem:[#allocation8 + $0x8] sm:$0xff] %vm1601_vm2, %v2078_v6 }
 0x38c   :  { %2622 = shalt.err (!%p2619_p0)
}
 0x38d   :  { %s2623_s12 = scalar_lea.hbm %s2946_s5, 256 }
 0x38e   :  { %p2624_p1 = scmp.ne.s32.totalorder %s2946_s5, %s2623_s12  ;;  %p2627_p2 = scmp.lt.u32.totalorder %s2623_s12, %s2946_s5 }
 0x390   :  { %p2629_p3 = pnand %p2627_p2, %p2624_p1 }
 0x392   :  { %2632 = shalt.err (!%p2629_p3)
}
 0x393   :  { %2092 = dma.vmem_to_hbm [thread:$0]  %s2087_s4, 256, %s2946_s5, [#allocation4], %s2641_s30, %s2641_s30, %s2642_s6  }
 0x394   :  { %2637 = dma.done.wait [#allocation4], 256  }
 0x395   :  { %2638 = vsyncadd [#allocation4], 4294967040 }
 0x396   :  { %2096 = vsyncpa [#allocation3], 1 }
 0x397   :  { %2097 = vsyncpa [#allocation6], 1 }
 0x398   :  { %2098 = vsyncpa [#allocation4], 1 }

</bundles_post_ra>
